<compile_context>
chip_gen: v7x
topology: tpu7x:2x2x1
jax: 0.10.0
libtpu: 0.0.40
codegen_flags: <defaults>
</compile_context>

<pallas_src>
import jax
import jax.numpy as jnp
from jax.experimental import pallas as pl
from jax.experimental.pallas import tpu as pltpu


def decoder_block_kernel(p_ref, w_ref, cb_ref, sc_ref, bs_ref, out_ref):
    """One batch sample per grid step.

    p_ref : (1, 9*Cin, H*W)  im2col patches, spatial in the lane dim
    w_ref : (Cout, 9*Cin)    flipped ConvTranspose2d weight as a dense matrix
    cb_ref: (Cout, 1)        conv bias
    sc_ref: (1, Cout, 1)     AdaIN scale = emotion @ scale_w + scale_b (precomputed)
    bs_ref: (1, Cout, 1)     AdaIN bias  = emotion @ bias_w  + bias_b  (precomputed)
    out_ref: (1, Cout, H*W)  lane-dense output
    """
    hw = p_ref.shape[2]

    # --- ConvTranspose2d(k=3, s=1, p=1) as a single MXU matmul ---
    y = jnp.dot(w_ref[...], p_ref[0], preferred_element_type=jnp.float32)
    y = y + cb_ref[...]                                            # (Cout, HW)

    # --- AdaIN: instance norm over the spatial (lane) axis, unbiased std ---
    mean = jnp.mean(y, axis=1, keepdims=True)                      # (Cout, 1)
    yc = y - mean
    var = jnp.sum(yc * yc, axis=1, keepdims=True) * (1.0 / (hw - 1))
    std = jnp.maximum(jnp.sqrt(var), 1e-5)
    inv_std = pl.reciprocal(std)                                   # (Cout, 1), exact
    out = sc_ref[0] * (yc * inv_std) + bs_ref[0]

    # --- ReLU + lane-dense store ---
    out_ref[0] = jnp.maximum(out, 0.0).astype(out_ref.dtype)


def decoder_block(x_nchw, emotion, params):
    """x_nchw: (N, Cin, H, W) (PyTorch layout); emotion: (N, E). Returns (N, Cout, H, W)."""
    N, Cin, H, W = x_nchw.shape
    w_ct = params["conv_w"]                        # (Cin, Cout, 3, 3), PyTorch layout
    Cout = w_ct.shape[1]
    HW = H * W
    KC = 9 * Cin

    # ConvTranspose2d(k=3,s=1,p=1) == "same" 3x3 conv with the spatially flipped,
    # channel-swapped weight. Flatten to (Cout, 9*Cin) with tap ordering (dy, dx, ci).
    w_mat = jnp.transpose(jnp.flip(w_ct, axis=(2, 3)), (1, 2, 3, 0)).reshape(Cout, KC)

    # im2col in the wrapper (tiny: N*HW*9*Cin*4B ~ 73 KiB at test sizes).
    # TODO(synk): at production sizes, fold padding + patch extraction into the
    # kernel (spatial tiles + halo, two-phase instance-norm) instead of
    # materializing x_pad / patches in HBM.
    x_pad = jnp.pad(x_nchw, ((0, 0), (0, 0), (1, 1), (1, 1)))
    patches = jnp.stack(
        [x_pad[:, :, dy:dy + H, dx:dx + W] for dy in range(3) for dx in range(3)],
        axis=1)                                    # (N, 9, Cin, H, W)
    patches = patches.reshape(N, KC, HW)

    # AdaIN condition linears hoisted out of the kernel (M=1 matmuls, plain XLA).
    scale = (emotion @ params["scale_w"] + params["scale_b"])[:, :, None]  # (N, Cout, 1)
    bias = (emotion @ params["bias_w"] + params["bias_b"])[:, :, None]     # (N, Cout, 1)
    conv_b = params["conv_b"].reshape(Cout, 1)

    out_flat = pl.pallas_call(
        decoder_block_kernel,
        out_shape=jax.ShapeDtypeStruct((N, Cout, HW), jnp.float32),
        grid_spec=pltpu.PrefetchScalarGridSpec(
            num_scalar_prefetch=0,
            grid=(N,),  # parallel across 2 TCs on v7x; cheap 2-step loop on v5e/v6e
            in_specs=[
                pl.BlockSpec((1, KC, HW), lambda n: (n, 0, 0)),
                pl.BlockSpec((Cout, KC), lambda n: (0, 0)),
                pl.BlockSpec((Cout, 1), lambda n: (0, 0)),
                pl.BlockSpec((1, Cout, 1), lambda n: (n, 0, 0)),
                pl.BlockSpec((1, Cout, 1), lambda n: (n, 0, 0)),
            ],
            out_specs=pl.BlockSpec((1, Cout, HW), lambda n: (n, 0, 0)),
        ),
        compiler_params=pltpu.CompilerParams(dimension_semantics=("parallel",)),
    )(patches, w_mat, conv_b, scale, bias)

    return out_flat.reshape(N, Cout, H, W)


def decoder_block_ref(x_nchw, emotion, params):
    """Pure-JAX NCHW reference using the scatter definition of transposed conv."""
    N, Cin, H, W = x_nchw.shape
    w_ct = params["conv_w"]
    Cout = w_ct.shape[1]
    out_full = jnp.zeros((N, Cout, H + 2, W + 2), jnp.float32)
    for kh in range(3):
        for kw in range(3):
            contrib = jnp.einsum("nchw,co->nohw", x_nchw, w_ct[:, :, kh, kw])
            out_full = out_full.at[:, :, kh:kh + H, kw:kw + W].add(contrib)
    y = out_full[:, :, 1:1 + H, 1:1 + W] + params["conv_b"].reshape(1, Cout, 1, 1)
    mean = y.mean(axis=(2, 3), keepdims=True)
    var = ((y - mean) ** 2).sum(axis=(2, 3), keepdims=True) / (H * W - 1)
    std = jnp.maximum(jnp.sqrt(var), 1e-5)
    normalized = (y - mean) / std
    scale = (emotion @ params["scale_w"] + params["scale_b"])[:, :, None, None]
    bias = (emotion @ params["bias_w"] + params["bias_b"])[:, :, None, None]
    return jnp.maximum(scale * normalized + bias, 0.0)


if __name__ == "__main__":
    N, Cin, Cout, H, W, E = 2, 4, 8, 16, 16, 8

    key = jax.random.PRNGKey(0)
    k_x, k_e, k_cw, k_cb, k_sw, k_bw = jax.random.split(key, 6)

    # deterministic synthetic parameters (shapes follow the nn module __init__)
    params = {
        "conv_w": jax.random.normal(k_cw, (Cin, Cout, 3, 3), jnp.float32) * 0.1,
        "conv_b": jax.random.normal(k_cb, (Cout,), jnp.float32) * 0.1,
        "scale_w": jax.random.normal(k_sw, (E, Cout), jnp.float32) * 0.1,
        "scale_b": jnp.ones((Cout,), jnp.float32),
        "bias_w": jax.random.normal(k_bw, (E, Cout), jnp.float32) * 0.1,
        "bias_b": jnp.zeros((Cout,), jnp.float32),
    }

    # inputs in PyTorch NCHW layout: x is (2, 4, 16, 16)
    x = jax.random.normal(k_x, (N, Cin, H, W), jnp.float32)
    emotion = jax.random.normal(k_e, (N, E), jnp.float32)

    out = decoder_block(x, emotion, params)
    out = jax.block_until_ready(out)

    ref = decoder_block_ref(x, emotion, params)
    assert out.shape == (N, Cout, H, W)
    assert jnp.allclose(out, ref, atol=1e-4, rtol=1e-4), (
        float(jnp.max(jnp.abs(out - ref))))

    print("KERNEL_OK")
</pallas_src>

<mosaic_0001>
module attributes {stable_mosaic.version = 11 : i64} {
  func.func @decoder_block_kernel(%arg0: i32, %arg1: memref<1x36x256xf32, #tpu.memory_space<vmem>>, %arg2: memref<8x36xf32, #tpu.memory_space<vmem>>, %arg3: memref<8x1xf32, #tpu.memory_space<vmem>>, %arg4: memref<1x8x1xf32, #tpu.memory_space<vmem>>, %arg5: memref<1x8x1xf32, #tpu.memory_space<vmem>>, %arg6: memref<1x8x256xf32, #tpu.memory_space<vmem>>) attributes {dimension_semantics = [#tpu.dimension_semantics<parallel>], iteration_bounds = array<i64: 2>, scalar_prefetch = 0 : i64, scratch_operands = 0 : i64, tpu.core_type = #tpu.core_type<tc>, window_params = [{transform_indices = @transform_0, window_bounds = array<i64: 1, 36, 256>}, {pipeline_mode = #tpu.pipeline_mode<synchronous>, transform_indices = @transform_1, window_bounds = array<i64: 8, 36>}, {pipeline_mode = #tpu.pipeline_mode<synchronous>, transform_indices = @transform_2, window_bounds = array<i64: 8, 1>}, {transform_indices = @transform_3, window_bounds = array<i64: 1, 8, 1>}, {transform_indices = @transform_4, window_bounds = array<i64: 1, 8, 1>}, {transform_indices = @transform_5, window_bounds = array<i64: 1, 8, 256>}]} {
    %c0 = arith.constant 0 : index
    %c0_0 = arith.constant 0 : index
    %0 = vector.load %arg2[%c0, %c0_0] : memref<8x36xf32, #tpu.memory_space<vmem>>, vector<8x36xf32>
    %c0_1 = arith.constant 0 : index
    %c0_2 = arith.constant 0 : index
    %c0_3 = arith.constant 0 : index
    %1 = vector.load %arg1[%c0_1, %c0_2, %c0_3] : memref<1x36x256xf32, #tpu.memory_space<vmem>>, vector<1x36x256xf32>
    %2 = vector.shape_cast %1 : vector<1x36x256xf32> to vector<36x256xf32>
    %cst = arith.constant dense<0.000000e+00> : vector<8x256xf32>
    %3 = tpu.matmul %0, %2, %cst {dimension_numbers = #tpu.dot_dimension_numbers<[1], [0], [0], [1], [0, 0, 1, 1], [], []>} : vector<8x36xf32>, vector<36x256xf32>, vector<8x256xf32> -> vector<8x256xf32>
    %c0_4 = arith.constant 0 : index
    %c0_5 = arith.constant 0 : index
    %4 = vector.load %arg3[%c0_4, %c0_5] : memref<8x1xf32, #tpu.memory_space<vmem>>, vector<8x1xf32>
    %5 = vector.broadcast %4 : vector<8x1xf32> to vector<8x256xf32>
    %6 = arith.addf %3, %5 : vector<8x256xf32>
    %cst_6 = arith.constant dense<0.000000e+00> : vector<8xf32>
    %7 = vector.multi_reduction <add>, %6, %cst_6 [1] : vector<8x256xf32> to vector<8xf32>
    %8 = vector.shape_cast %7 : vector<8xf32> to vector<8x1xf32>
    %cst_7 = arith.constant 2.560000e+02 : f32
    %9 = vector.broadcast %cst_7 : f32 to vector<8x1xf32>
    %10 = arith.divf %8, %9 : vector<8x1xf32>
    %11 = vector.broadcast %10 : vector<8x1xf32> to vector<8x256xf32>
    %12 = arith.subf %6, %11 : vector<8x256xf32>
    %13 = arith.mulf %12, %12 : vector<8x256xf32>
    %cst_8 = arith.constant dense<0.000000e+00> : vector<8xf32>
    %14 = vector.multi_reduction <add>, %13, %cst_8 [1] : vector<8x256xf32> to vector<8xf32>
    %15 = vector.shape_cast %14 : vector<8xf32> to vector<8x1xf32>
    %cst_9 = arith.constant 0.00392156886 : f32
    %16 = vector.broadcast %cst_9 : f32 to vector<8x1xf32>
    %17 = arith.mulf %15, %16 : vector<8x1xf32>
    %18 = math.sqrt %17 : vector<8x1xf32>
    %cst_10 = arith.constant 9.99999974E-6 : f32
    %19 = vector.broadcast %cst_10 : f32 to vector<8x1xf32>
    %20 = arith.maximumf %18, %19 : vector<8x1xf32>
    %21 = tpu.reciprocal %20 : vector<8x1xf32> -> vector<8x1xf32>
    %c0_11 = arith.constant 0 : index
    %c0_12 = arith.constant 0 : index
    %c0_13 = arith.constant 0 : index
    %22 = vector.load %arg4[%c0_11, %c0_12, %c0_13] : memref<1x8x1xf32, #tpu.memory_space<vmem>>, vector<1x8x1xf32>
    %23 = vector.shape_cast %22 : vector<1x8x1xf32> to vector<8x1xf32>
    %24 = vector.broadcast %21 : vector<8x1xf32> to vector<8x256xf32>
    %25 = arith.mulf %12, %24 : vector<8x256xf32>
    %26 = vector.broadcast %23 : vector<8x1xf32> to vector<8x256xf32>
    %27 = arith.mulf %26, %25 : vector<8x256xf32>
    %c0_14 = arith.constant 0 : index
    %c0_15 = arith.constant 0 : index
    %c0_16 = arith.constant 0 : index
    %28 = vector.load %arg5[%c0_14, %c0_15, %c0_16] : memref<1x8x1xf32, #tpu.memory_space<vmem>>, vector<1x8x1xf32>
    %29 = vector.shape_cast %28 : vector<1x8x1xf32> to vector<8x1xf32>
    %30 = vector.broadcast %29 : vector<8x1xf32> to vector<8x256xf32>
    %31 = arith.addf %27, %30 : vector<8x256xf32>
    %cst_17 = arith.constant 0.000000e+00 : f32
    %32 = vector.broadcast %cst_17 : f32 to vector<8x256xf32>
    %33 = arith.maximumf %31, %32 : vector<8x256xf32>
    %c0_18 = arith.constant 0 : index
    %c0_19 = arith.constant 0 : index
    %c0_20 = arith.constant 0 : index
    %34 = vector.load %arg6[%c0_18, %c0_19, %c0_20] : memref<1x8x256xf32, #tpu.memory_space<vmem>>, vector<1x8x256xf32>
    %35 = vector.shape_cast %34 : vector<1x8x256xf32> to vector<8x256xf32>
    %36 = vector.shape_cast %33 : vector<8x256xf32> to vector<1x8x256xf32>
    tpu.vector_store %arg6[%c0_18, %c0_19, %c0_20], %36 {strides = array<i32>} : memref<1x8x256xf32, #tpu.memory_space<vmem>>, vector<1x8x256xf32>,
    return
  }
  func.func @transform_0(%arg0: i32) -> (i32, i32, i32) {
    %c0_i32 = arith.constant 0 : i32
    %c0_i32_0 = arith.constant 0 : i32
    %c0_i32_1 = arith.constant 0 : i32
    return %arg0, %c0_i32, %c0_i32_0 : i32, i32, i32
  }
  func.func @transform_1(%arg0: i32) -> (i32, i32) {
    %c0_i32 = arith.constant 0 : i32
    %c0_i32_0 = arith.constant 0 : i32
    %c0_i32_1 = arith.constant 0 : i32
    return %c0_i32, %c0_i32_0 : i32, i32
  }
  func.func @transform_2(%arg0: i32) -> (i32, i32) {
    %c0_i32 = arith.constant 0 : i32
    %c0_i32_0 = arith.constant 0 : i32
    %c0_i32_1 = arith.constant 0 : i32
    return %c0_i32, %c0_i32_0 : i32, i32
  }
  func.func @transform_3(%arg0: i32) -> (i32, i32, i32) {
    %c0_i32 = arith.constant 0 : i32
    %c0_i32_0 = arith.constant 0 : i32
    %c0_i32_1 = arith.constant 0 : i32
    return %arg0, %c0_i32, %c0_i32_0 : i32, i32, i32
  }
  func.func @transform_4(%arg0: i32) -> (i32, i32, i32) {
    %c0_i32 = arith.constant 0 : i32
    %c0_i32_0 = arith.constant 0 : i32
    %c0_i32_1 = arith.constant 0 : i32
    return %arg0, %c0_i32, %c0_i32_0 : i32, i32, i32
  }
  func.func @transform_5(%arg0: i32) -> (i32, i32, i32) {
    %c0_i32 = arith.constant 0 : i32
    %c0_i32_0 = arith.constant 0 : i32
    %c0_i32_1 = arith.constant 0 : i32
    return %arg0, %c0_i32, %c0_i32_0 : i32, i32, i32
  }
}

</mosaic_0001>

<bundles_post_ra>
// kernel: tpu_custom_call.1
= control target key start
LH: loop header
LB: loop body
LE: loop exit
PB: predicated region body
PF: predicated region fallthrough
CT: control target
= control target key end

     0   :  { %10 = vsyncpa [#allocation3], 0  ;;  %s784_s0 = inlined_call_operand.vmem [shape: f32[2,36,256], index: 0, kind: input, shape index: {}]   ;;  %s785_s1 = inlined_call_operand.vmem [shape: f32[8,36], index: 1, kind: input, shape index: {}]   ;;  %s786_s2 = inlined_call_operand.vmem [shape: f32[8,1], index: 2, kind: input, shape index: {}]   ;;  %s787_s3 = inlined_call_operand.vmem [shape: f32[2,8,1], index: 3, kind: input, shape index: {}]   ;;  %s788_s4 = inlined_call_operand.vmem [shape: f32[2,8,1], index: 4, kind: input, shape index: {}]   ;;  %s789_s5 = inlined_call_operand.hbm [shape: f32[2,8,256], index: 5, kind: output, shape index: {}]  }
   0x1   :  { %12 = vsyncpa [#allocation3 + $0x1], 0  ;;  %s668_s18 = smov 0   ;;  %s670_s19 = smov 0  }
   0x2   :  { %s672_s20 = smov 0   ;;  %s674_s21 = smov 0  }
   0x3 LB: > { %s689_s22 = sadd.s32 4294967295, %s633_s21   ;;  %s498_s23 = sadd.s32 4294967294, %s633_s21   ;;  %s633_s21 = sphi %s674_s21, %s795_s21   ;;  %s629_s20 = sphi %s672_s20, %s794_s20   ;;  %s625_s19 = sphi %s670_s19, %s793_s19   ;;  %s621_s18 = sphi %s668_s18, %s792_s18  }
   0x4   : > { %s693_s24 = sadd.s32 1, %s633_s21   ;;  %s145_s25 = sadd.s32 1, %s629_s20 }
   0x5   : > { %s142_s26 = ssub.s32 %s633_s21, %s693_s24  ;;  %p155_p0 = scmp.ne.s32.totalorder %s629_s20, %s625_s19 }
   0x6   : > { %p143_p1 = scmp.eq.s32.totalorder %s142_s26, 0  ;;  %p156_p2 = scmp.eq.s32.totalorder %s689_s22, 1 }
   0x7   : > { %p161_p3 = scmp.ne.s32.totalorder %s625_s19, %s621_s18  ;;  %p162_p4 = scmp.eq.s32.totalorder %s498_s23, 1 }
   0x8   : > { %s704_s27 = scalar_select %p143_p1, %s629_s20, %s145_s25  }
   0x9   : > { %p706_p5 = por %p156_p2, %p155_p0  ;;  %p710_p6 = por %p162_p4, %p161_p3 }
   0xa   : > { %p501_p7 = scmp.ge.s32.totalorder %s633_s21, 1  ;;  %p208_p8 = scmp.lt.s32.totalorder %s633_s21, 3 }
   0xc   : > { %p209_p9 = pnand %p501_p7, %p208_p8 }
   0xd   : > { %p244_p10 = scmp.lt.s32.totalorder (!%p209_p9), %s689_s22, 1  ;;  %v635_v0 = vmov (!%p209_p9), 0.0   ;;  %v636_v1 = vmov (!%p209_p9), 0   ;;  %v268_v2 = vld [vmem:[%s786_s2] sm:$0xff] (!%p209_p9)  ;;  %vm278_vm0 = vcmask (!%p209_p9), 1043456   ;;  %vm274_vm1 = vcmask (!%p209_p9), 293888  }
   0xe   : > { %212 = sbr.rel (%p209_p9) target bundleno = 600 (0x258), region = 40  ;;  %349 = vmatprep.mubr.f32.mxu0 (!%p209_p9), %v635_v0  ;;  %565 = vset.pattern.permute.xlu0 (!%p209_p9), %v636_v1  ;;  %v257_v17 = vld [vmem:[%s785_s1] sm:$0xff] (!%p209_p9)  ;;  %s241_s30 = sand.u32 (!%p209_p9), 1, %s625_s19  }
   0xf   : > { %271 = vperm.xlu0 (!%p209_p9), %565, %v268_v2   ;;  %566 = vset.pattern.permute.xlu1 (!%p209_p9), %v636_v1  ;;  %s502_s6 = sshll.u32 (!%p209_p9), %s241_s30, 4  ;;  %s401_s13 = scalar_lea.sflag (!%p209_p9), [#allocation3], %s241_s30 }
  0x15   : > { %s721_s7 = scalar_select %p244_p10, %s689_s22, 1 }
  0x17   : > { %s523_s8 = smul.u32 80, %s721_s7  ;;  %s504_s14 = sshll.u32 %s721_s7, 3 }
  0x18   : > { %s252_s17 = scalar_lea.vmem %s787_s3, %s504_s14  ;;  %s256_s26 = scalar_lea.vmem %s788_s4, %s504_s14 }
  0x19   : > { %s248_s11 = scalar_lea.vmem %s784_s0, %s523_s8  ;;  %v378_v31 = vld [vmem:[%s252_s17] sm:$0xff]  ;;  %s514_s7 = sshll.u32 %s689_s22, 8 }
  0x1a   : > { %v259_v3 = vld [vmem:[%s248_s11 + $0x8] sm:$0xff]  ;;  %v261_v4 = vld [vmem:[%s248_s11 + $0x18] sm:$0xff]  ;;  %v258_v5 = vld [vmem:[%s248_s11] sm:$0xff]  ;;  %s243_s8 = scalar_lea.vmem [#allocation2], %s502_s6  ;;  %s742_s12 = scalar_lea.hbm %s789_s5, %s514_s7 }
  0x1b   : > { %v515_v6 = vpack.c.bf16 %v261_v4, %v259_v3  ;;  %v260_v7 = vld [vmem:[%s248_s11 + $0x10] sm:$0xff]  ;;  %v263_v8 = vld [vmem:[%s248_s11 + $0x28] sm:$0xff]  ;;  %v265_v9 = vld [vmem:[%s248_s11 + $0x38] sm:$0xff]  ;;  %s415_s9 = sshll.u32 %s243_s8, 4  ;;  %s637_s14 = smov [#allocation2]   ;;  %s744_s9 = int_to_ptr.vmem [resolvable:$true] %s415_s9 }
  0x1c   : > { %v517_v10 = vpack.c.bf16 %v260_v7, %v258_v5  ;;  %v519_v11 = vpack.c.bf16 %v265_v9, %v263_v8  ;;  %v262_v12 = vld [vmem:[%s248_s11 + $0x20] sm:$0xff]  ;;  %v264_v13 = vld [vmem:[%s248_s11 + $0x30] sm:$0xff]  ;;  %v267_v15 = vld [vmem:[%s248_s11 + $0x48] sm:$0xf]  ;;  %s571_s22 = scalar_lea.vmem %s744_s9, 256  ;;  %s575_s15 = sshll.u32 %s637_s14, 4  ;;  %s576_s15 = int_to_ptr.vmem [resolvable:$false] %s575_s15 }
  0x1d   : > { %516 = vmatprep.subr.bf16.mxu0 %v515_v6  ;;  %v521_v14 = vpack.c.bf16 %v264_v13, %v262_v12  ;;  %v266_v16 = vld [vmem:[%s248_s11 + $0x40] sm:$0xf]  ;;  %p572_p11 = scmp.ne.s32.totalorder %s744_s9, %s571_s22  ;;  %s577_s16 = scalar_lea.vmem %s576_s15, 512 }
  0x1e   : > { %518 = vmatpush1.bf16.msra.mxu0 %v517_v10  ;;  %v388_v32 = vld [vmem:[%s256_s26] sm:$0xff]  ;;  %p578_p0 = scmp.lt.s32.totalorder %s744_s9, %s576_s15  ;;  %p579_p1 = scmp.lt.s32.totalorder %s577_s16, %s571_s22 }
  0x1f   : > { %520 = vmatprep.subr.bf16.mxu0 %v519_v11  ;;  %p573_p12 = pnand %p572_p11, %p706_p5 }
  0x20   : > { %p580_p2 = por %p579_p1, %p578_p0 }
  0x21   : > { %p574_p13 = pneg %p573_p12 }
  0x22   : > { %522 = vmatpush1.bf16.msra.mxu0 %v521_v14 }
  0x23   : > { %506 = vmatprep.subr.msk.mxu0 %vm278_vm0, %v267_v15  ;;  %p581_p3 = pnand %p580_p2, %p574_p13 }
  0x26   : > { %507 = vmatpush1.msk.msra.mxu0 %vm278_vm0, %v266_v16 }
  0x27   : > { %508 = vmatmul.mubr.msk.f32.vlgmr.msra.gmra.mrb[0].mxu0 %vm274_vm1, %v257_v17 }
  0x8e   : > { %v272_v18 = vpop.permute.xlu0 %271 }
  0xfa   : > { %v351_v19 = vpop.f32.mrb[0].mxu0 }
  0xfb   : > { %v352_v20 = vadd.f32 %v351_v19, %v272_v18  ;;  %v353_v21 = vpop.f32.mrb[1].mxu0 }
  0xfc   : > { %v354_v22 = vadd.f32 %v353_v21, %v272_v18 }
  0xfe   : > { %v356_v23 = vadd.f32 %v354_v22, %v352_v20 }
 0x100   : > { %357 = vadd.xlane.f32.xlu0 %v356_v23 }
 0x18d   : > { %v358_v24 = vpop.xlane.xlu0 %357 }
 0x18e   : > { %v360_v25 = vmul.f32 0.00390625, %v358_v24 }
 0x190   : > { %v361_v26 = vsub.f32 %v352_v20, %v360_v25  ;;  %v362_v27 = vsub.f32 %v354_v22, %v360_v25 }
 0x192   : > { %v363_v28 = vmul.f32 %v361_v26, %v361_v26  ;;  %v364_v29 = vmul.f32 %v362_v27, %v362_v27 }
 0x194   : > { %v365_v30 = vadd.f32 %v364_v29, %v363_v28 }
 0x196   : > { %366 = vadd.xlane.f32.xlu1 %v365_v30 }
 0x1a7   : > { %383 = vperm.xlu1 %566, %v378_v31  }
 0x1ab   : > { %391 = vperm.xlu1 %566, %v388_v32  }
 0x223   : > { %v367_v33 = vpop.xlane.xlu1 %366 }
 0x224   : > { %v368_v34 = vmul.f32 0.003921569, %v367_v33 }
 0x226   : > { %567 = vrsqrt.f32 %v368_v34  ;;  %vm371_vm2 = vcmp.eq.f32.partialorder %v368_v34, inf  ;;  %v374_v37 = vand.u32 2147483648, %v368_v34  ;;  %vm373_vm3 = vcmp.eq.f32.partialorder %v368_v34, 0.0 }
 0x227   : > { %v384_v41 = vpop.permute.xlu1 %383 }
 0x22b   : > { %v392_v47 = vpop.permute.xlu1 %391 }
 0x230   : > { %v568_v35 = vpop.eup %567 }
 0x231   : > { %v370_v36 = vmul.f32 %v568_v35, %v368_v34 }
 0x233   : > { %v372_v38 = vsel %vm371_vm2, %v368_v34, %v370_v36 }
 0x234   : > { %v375_v39 = vsel %vm373_vm3, %v374_v37, %v372_v38 }
 0x235   : > { %v376_v40 = vmax.f32 %v375_v39, 1e-05 }
 0x237   : > { %569 = vrcp.f32 %v376_v40 }
 0x241   : > { %v570_v42 = vpop.eup %569 }
 0x242   : > { %v379_v43 = vmul.f32 %v570_v42, %v361_v26  ;;  %v380_v44 = vmul.f32 %v570_v42, %v362_v27 }
 0x244   : > { %v386_v45 = vmul.f32 %v384_v41, %v379_v43  ;;  %v387_v46 = vmul.f32 %v384_v41, %v380_v44 }
 0x246   : > { %v394_v48 = vadd.f32 %v392_v47, %v386_v45  ;;  %v395_v49 = vadd.f32 %v392_v47, %v387_v46 }
 0x248   : > { %v396_v50 = vmax.f32 %v394_v48, 0.0  ;;  %v397_v51 = vmax.f32 %v395_v49, 0.0 }
 0x24a   : > { %398 = vst [vmem:[%s243_s8] sm:$0xff] %v396_v50  ;;  %399 = vst [vmem:[%s243_s8 + $0x8] sm:$0xff] %v397_v51 }
 0x24b   : > { %584 = shalt.err (!%p581_p3)
}
 0x24c   : > { %s585_s17 = scalar_lea.hbm %s742_s12, 256  ;;  %s589_s26 = scalar_lea.hbm %s789_s5, 512 }
 0x24d   : > { %p586_p4 = scmp.ne.s32.totalorder %s742_s12, %s585_s17  ;;  %p590_p9 = scmp.lt.u32.totalorder %s742_s12, %s789_s5 }
 0x24e   : > { %p591_p10 = scmp.lt.u32.totalorder %s589_s26, %s585_s17  ;;  %p593_p12 = scmp.lt.u32.totalorder %s585_s17, %s742_s12 }
 0x24f   : > { %p587_p7 = pnand %p586_p4, %p706_p5 }
 0x250   : > { %p592_p11 = por %p591_p10, %p590_p9 }
 0x251   : > { %p588_p8 = pneg %p587_p7 }
 0x252   : > { %p594_p13 = por %p593_p12, %p592_p11 }
 0x254   : > { %p595_p0 = pnand %p594_p13, %p588_p8 }
 0x256   : > { %598 = shalt.err (!%p595_p0)
}
 0x257   : > { %524 = dma.vmem_to_hbm [thread:$0]  (%p706_p5), %s744_s9, 256, %s742_s12, %s401_s13  }
 0x258 PF: > { %p530_p1 = scmp.ge.s32.totalorder %s633_s21, 2  ;;  %s427_s7 = sand.u32 1, %s621_s18  }
 0x259   : > { %s428_s8 = scalar_lea.sflag [#allocation3], %s427_s7 }
 0x25a   : > { %p527_p2 = pnand %p530_p1, %p710_p6 }
 0x25c   : > { %616 = dma.done.wait (!%p527_p2), %s428_s8, 256  }
 0x25d   : > { %618 = vsyncadd (!%p527_p2), %s428_s8, 4294967040  ;;  %p15_p3 = scmp.ge.s32.totalorder %s693_s24, 4   ;;  %s792_s18 = smov %s625_s19 }
 0x25e   : > { %s793_s19 = smov %s629_s20  ;;  %s794_s20 = smov %s704_s27 }
 0x25f   : > { %s795_s21 = smov %s693_s24  ;;  %17 = sbr.rel (!%p15_p3) target bundleno = 3 (0x3), region = 81 }
 0x266   :  { %433 = vsyncpa [#allocation3], 1 }
 0x267   :  { %435 = vsyncpa [#allocation3 + $0x1], 1 }

</bundles_post_ra>
